<compile_context>
chip_gen: v7x
topology: tpu7x:2x2x1
jax: 0.10.0
libtpu: 0.0.40
codegen_flags: <defaults>
</compile_context>

<pallas_src>
import functools

import jax
import jax.numpy as jnp
from jax import lax
from jax.experimental import pallas as pl
from jax.experimental.pallas import tpu as pltpu


def _round_up(x, m):
    return ((x + m - 1) // m) * m


def _binary_classifier_kernel(x_ref, w_ref, b_ref, o_ref, acc_ref, *, d_total, block_d):
    """One (batch-tile, feature-tile) grid step.

    x_ref  : (TB, TK) VMEM  -- tile of input rows (native dtype)
    w_ref  : (TK, 1)  VMEM  -- weight column chunk (native dtype)
    b_ref  : (1,)     SMEM  -- bias scalar (f32)
    o_ref  : (TB, 1)  VMEM  -- probabilities for this batch tile
    acc_ref: (TB, 1)  VMEM  -- f32 accumulator, resident across the K axis
    """
    k = pl.program_id(1)

    @pl.when(k == 0)
    def _init():
        acc_ref[...] = jnp.zeros_like(acc_ref)

    x = x_ref[...]
    w = w_ref[...]
    if d_total % block_d != 0:
        # Ragged final feature block: zero the out-of-bounds columns of x and
        # rows of w so garbage in the partially OOB block never reaches valid
        # outputs (0 * 0 = 0 even if the raw fill is NaN/Inf).
        col = k * block_d + lax.broadcasted_iota(jnp.int32, x.shape, 1)
        x = jnp.where(col < d_total, x, jnp.zeros_like(x))
        row = k * block_d + lax.broadcasted_iota(jnp.int32, w.shape, 0)
        w = jnp.where(row < d_total, w, jnp.zeros_like(w))

    # (TB, TK) @ (TK, 1): contraction is x's lane (minor) dim against w's sublane
    # dim -- the natural MXU feed, so the large x tile is never transposed.
    acc_ref[...] += lax.dot_general(
        x,
        w,
        dimension_numbers=(((1,), (0,)), ((), ())),
        preferred_element_type=jnp.float32,
    )

    @pl.when(k == pl.num_programs(1) - 1)
    def _finalize():
        z = acc_ref[...] + b_ref[0]
        # Exact sigmoid: exp + true divide (both EUP; the approx reciprocal was
        # the source of the earlier numeric mismatch).
        o_ref[...] = (1.0 / (1.0 + jnp.exp(-z))).astype(o_ref.dtype)


def binary_classifier_forward(x, weight, bias, *, block_b=None, block_d=None):
    """Forward pass of BinaryClassifier: sigmoid(x @ weight.T + bias).

    x: [B, D]; weight: [1, D] (PyTorch nn.Linear layout); bias: [1].
    Returns probabilities of shape [B, 1] in x's dtype.
    """
    B, D = x.shape
    dtype = x.dtype
    itemsize = jnp.dtype(dtype).itemsize

    # Keep the activation stream in its native dtype (no f32 upcast: this kernel
    # is purely HBM-bound on reading x); accumulate in f32 on the MXU.
    w_col = jnp.reshape(weight, (D, 1)).astype(dtype)
    b_vec = jnp.reshape(bias, (1,)).astype(jnp.float32)

    target_bytes = 2 * 1024 * 1024  # ~2 MiB of x per pipeline buffer

    # Feature tile: full D unless even a 128-row tile would blow the budget,
    # then a 128-multiple chunk (enables the K-reduction axis).
    if block_d is None:
        max_tk = max(128, (target_bytes // (128 * itemsize)) // 128 * 128)
        tk = D if D <= max_tk else max_tk
    else:
        tk = min(block_d, D)
    num_k = pl.cdiv(D, tk)

    # Batch tile: ~target_bytes of x per tile, multiple of 128 rows (clean
    # sublane packing for f32/bf16 and >=2 tiles for v7x megacore at large B),
    # collapsed to a single full-batch block when everything fits.
    sub = 8 if itemsize >= 4 else 32
    if block_b is None:
        tb = max(128, (target_bytes // (tk * itemsize)) // 128 * 128)
        tb = min(tb, 2048)
    else:
        tb = block_b
    if tb >= B:
        tb = B               # full-dim block: no divisibility constraint
    else:
        tb = _round_up(tb, sub)
    num_b = pl.cdiv(B, tb)

    kernel = functools.partial(_binary_classifier_kernel, d_total=D, block_d=tk)

    cost = pl.CostEstimate(
        flops=2 * B * D,
        transcendentals=B,
        bytes_accessed=B * D * itemsize + D * itemsize + B * itemsize + 4,
    )

    out = pl.pallas_call(
        kernel,
        out_shape=jax.ShapeDtypeStruct((B, 1), dtype),
        grid_spec=pltpu.PrefetchScalarGridSpec(
            num_scalar_prefetch=0,
            grid=(num_b, num_k),
            in_specs=[
                pl.BlockSpec((tb, tk), lambda i, k: (i, k)),          # x tile (pipelined)
                pl.BlockSpec((tk, 1), lambda i, k: (k, 0)),           # weight chunk
                pl.BlockSpec(memory_space=pltpu.MemorySpace.SMEM),    # bias scalar
            ],
            out_specs=pl.BlockSpec((tb, 1), lambda i, k: (i, 0)),
            scratch_shapes=[pltpu.VMEM((tb, 1), jnp.float32)],
        ),
        compiler_params=pltpu.CompilerParams(
            dimension_semantics=("parallel", "arbitrary"),
            vmem_limit_bytes=32 * 1024 * 1024,
        ),
        cost_estimate=cost,
    )(x, w_col, b_vec)

    return out


if __name__ == "__main__":
    key = jax.random.PRNGKey(0)
    k_x, k_w, k_b = jax.random.split(key, 3)

    batch, input_dim = 8, 32
    x = jax.random.normal(k_x, (batch, input_dim), dtype=jnp.float32)
    # Deterministic "Linear(input_dim, 1)" parameters (PyTorch-style uniform bound).
    bound = 1.0 / jnp.sqrt(jnp.float32(input_dim))
    weight = jax.random.uniform(
        k_w, (1, input_dim), dtype=jnp.float32, minval=-bound, maxval=bound
    )
    bias = jax.random.uniform(
        k_b, (1,), dtype=jnp.float32, minval=-bound, maxval=bound
    )

    out = jax.block_until_ready(binary_classifier_forward(x, weight, bias))
    ref = jax.nn.sigmoid(x @ weight.T + bias)
    assert out.shape == (batch, 1), out.shape
    assert jnp.allclose(out, ref, atol=2e-3), "mismatch vs reference (single tile)"

    # Multi batch-tile path with a ragged final block (no wrapper padding).
    b2 = 300
    x2 = jax.random.normal(jax.random.PRNGKey(1), (b2, input_dim), dtype=jnp.float32)
    out2 = jax.block_until_ready(
        binary_classifier_forward(x2, weight, bias, block_b=128)
    )
    ref2 = jax.nn.sigmoid(x2 @ weight.T + bias)
    assert out2.shape == (b2, 1), out2.shape
    assert jnp.allclose(out2, ref2, atol=2e-3), "mismatch vs reference (batch-tiled)"

    # Feature-reduction (K-tiled) path with a ragged final feature block.
    d3 = 160
    x3 = jax.random.normal(jax.random.PRNGKey(2), (16, d3), dtype=jnp.float32)
    w3 = jax.random.uniform(
        jax.random.PRNGKey(3), (1, d3), dtype=jnp.float32, minval=-bound, maxval=bound
    )
    out3 = jax.block_until_ready(
        binary_classifier_forward(x3, w3, bias, block_d=128)
    )
    ref3 = jax.nn.sigmoid(x3 @ w3.T + bias)
    assert out3.shape == (16, 1), out3.shape
    assert jnp.allclose(out3, ref3, atol=2e-3), "mismatch vs reference (K-tiled)"

    print("KERNEL_OK")
</pallas_src>

<mosaic_0001>
module attributes {stable_mosaic.version = 11 : i64} {
  func.func @_binary_classifier_kernel(%arg0: i32, %arg1: i32, %arg2: memref<8x32xf32, #tpu.memory_space<vmem>>, %arg3: memref<32x1xf32, #tpu.memory_space<vmem>>, %arg4: memref<1xf32, #tpu.memory_space<smem>>, %arg5: memref<8x1xf32, #tpu.memory_space<vmem>>, %arg6: memref<8x1xf32, #tpu.memory_space<vmem>>) attributes {dimension_semantics = [#tpu.dimension_semantics<parallel>, #tpu.dimension_semantics<arbitrary>], iteration_bounds = array<i64: 1, 1>, scalar_prefetch = 0 : i64, scratch_operands = 1 : i64, tpu.core_type = #tpu.core_type<tc>, window_params = [{transform_indices = @transform_0, window_bounds = array<i64: 8, 32>}, {transform_indices = @transform_1, window_bounds = array<i64: 32, 1>}, {transform_indices = @transform_2, window_bounds = array<i64: 1>}, {transform_indices = @transform_3, window_bounds = array<i64: 8, 1>}]} {
    %c0_i32 = arith.constant 0 : i32
    %0 = arith.cmpi eq, %arg1, %c0_i32 : i32
    %1 = arith.extui %0 : i1 to i32
    %c0_i32_0 = arith.constant 0 : i32
    %2 = arith.cmpi ne, %1, %c0_i32_0 : i32
    scf.if %2 {
      %cst_10 = arith.constant 0.000000e+00 : f32
      %12 = vector.broadcast %cst_10 : f32 to vector<8x1xf32>
      %c0_11 = arith.constant 0 : index
      %c0_12 = arith.constant 0 : index
      %13 = vector.load %arg6[%c0_11, %c0_12] : memref<8x1xf32, #tpu.memory_space<vmem>>, vector<8x1xf32>
      tpu.vector_store %arg6[%c0_11, %c0_12], %12 {strides = array<i32>} : memref<8x1xf32, #tpu.memory_space<vmem>>, vector<8x1xf32>,
    } else {
    }
    %c0 = arith.constant 0 : index
    %c0_1 = arith.constant 0 : index
    %3 = vector.load %arg2[%c0, %c0_1] : memref<8x32xf32, #tpu.memory_space<vmem>>, vector<8x32xf32>
    %c0_2 = arith.constant 0 : index
    %c0_3 = arith.constant 0 : index
    %4 = vector.load %arg3[%c0_2, %c0_3] : memref<32x1xf32, #tpu.memory_space<vmem>>, vector<32x1xf32>
    %c0_4 = arith.constant 0 : index
    %c0_5 = arith.constant 0 : index
    %5 = vector.load %arg6[%c0_4, %c0_5] : memref<8x1xf32, #tpu.memory_space<vmem>>, vector<8x1xf32>
    %cst = arith.constant dense<0.000000e+00> : vector<8x1xf32>
    %6 = tpu.matmul %3, %4, %cst {dimension_numbers = #tpu.dot_dimension_numbers<[1], [0], [0], [1], [0, 0, 1, 1], [], []>} : vector<8x32xf32>, vector<32x1xf32>, vector<8x1xf32> -> vector<8x1xf32>
    %7 = arith.addf %5, %6 : vector<8x1xf32>
    %c0_6 = arith.constant 0 : index
    %c0_7 = arith.constant 0 : index
    %8 = vector.load %arg6[%c0_6, %c0_7] : memref<8x1xf32, #tpu.memory_space<vmem>>, vector<8x1xf32>
    tpu.vector_store %arg6[%c0_6, %c0_7], %7 {strides = array<i32>} : memref<8x1xf32, #tpu.memory_space<vmem>>, vector<8x1xf32>,
    %c0_i32_8 = arith.constant 0 : i32
    %9 = arith.cmpi eq, %arg1, %c0_i32_8 : i32
    %10 = arith.extui %9 : i1 to i32
    %c0_i32_9 = arith.constant 0 : i32
    %11 = arith.cmpi ne, %10, %c0_i32_9 : i32
    scf.if %11 {
      %c0_10 = arith.constant 0 : index
      %c0_11 = arith.constant 0 : index
      %12 = vector.load %arg6[%c0_10, %c0_11] : memref<8x1xf32, #tpu.memory_space<vmem>>, vector<8x1xf32>
      %c0_12 = arith.constant 0 : index
      %13 = memref.load %arg4[%c0_12] : memref<1xf32, #tpu.memory_space<smem>>
      %14 = vector.broadcast %13 : f32 to vector<8x1xf32>
      %15 = arith.addf %12, %14 : vector<8x1xf32>
      %cst_13 = arith.constant 0.000000e+00 : f32
      %16 = vector.broadcast %cst_13 : f32 to vector<8x1xf32>
      %17 = arith.subf %16, %15 : vector<8x1xf32>
      %18 = math.exp %17 : vector<8x1xf32>
      %cst_14 = arith.constant 1.000000e+00 : f32
      %19 = vector.broadcast %cst_14 : f32 to vector<8x1xf32>
      %20 = arith.addf %19, %18 : vector<8x1xf32>
      %cst_15 = arith.constant 1.000000e+00 : f32
      %21 = vector.broadcast %cst_15 : f32 to vector<8x1xf32>
      %22 = arith.divf %21, %20 : vector<8x1xf32>
      %c0_16 = arith.constant 0 : index
      %c0_17 = arith.constant 0 : index
      %23 = vector.load %arg5[%c0_16, %c0_17] : memref<8x1xf32, #tpu.memory_space<vmem>>, vector<8x1xf32>
      tpu.vector_store %arg5[%c0_16, %c0_17], %22 {strides = array<i32>} : memref<8x1xf32, #tpu.memory_space<vmem>>, vector<8x1xf32>,
    } else {
    }
    return
  }
  func.func @transform_0(%arg0: i32, %arg1: i32) -> (i32, i32) {
    %c0_i32 = arith.constant 0 : i32
    return %arg0, %arg1 : i32, i32
  }
  func.func @transform_1(%arg0: i32, %arg1: i32) -> (i32, i32) {
    %c0_i32 = arith.constant 0 : i32
    %c0_i32_0 = arith.constant 0 : i32
    return %arg1, %c0_i32 : i32, i32
  }
  func.func @transform_2(%arg0: i32, %arg1: i32) -> i32 {
    %c0_i32 = arith.constant 0 : i32
    %c0_i32_0 = arith.constant 0 : i32
    return %c0_i32 : i32
  }
  func.func @transform_3(%arg0: i32, %arg1: i32) -> (i32, i32) {
    %c0_i32 = arith.constant 0 : i32
    %c0_i32_0 = arith.constant 0 : i32
    return %arg0, %c0_i32 : i32, i32
  }
}

</mosaic_0001>

<bundles_post_ra>
// kernel: tpu_custom_call.1
= control target key start
LH: loop header
LB: loop body
LE: loop exit
PB: predicated region body
PF: predicated region fallthrough
CT: control target
= control target key end

     0   :  { %vm19_vm0 = vcmask 7168   ;;  %v152_v0 = vmov 0.0|0.0   ;;  %v153_v4 = vmov 0.0   ;;  %vm154_vm1 = vmmov 0   ;;  %s199_s1 = inlined_call_operand.vmem [shape: f32[32,1], index: 1, kind: input, shape index: {}]   ;;  %s200_s0 = inlined_call_operand.vmem [shape: f32[8,32], index: 0, kind: input, shape index: {}]   ;;  %s201_s2 = inlined_call_operand.<no memory space> [shape: f32[1], index: 2, kind: input, shape index: {}]   ;;  %s202_s3 = inlined_call_operand.vmem [shape: f32[8,1], index: 3, kind: output, shape index: {}]  }
   0x1   :  { %139 = vmatprep.subr.bf16.mxu0 %v152_v0  ;;  %v22_v1 = vld [vmem:[%s199_s1] sm:$0xff]  ;;  %v23_v2 = vld [vmem:[%s199_s1 + $0x8] sm:$0xff]  ;;  %v24_v3 = vld [vmem:[%s199_s1 + $0x10] sm:$0xff]  ;;  %20 = vst.msk [vmem:[#allocation2] sm:$0xff] %vm19_vm0, %v153_v4  ;;  %136 = vmatprep.mubr.msk.f32.mxu0 %vm154_vm1, %v153_v4  ;;  %vm27_vm2 = vcmask 261120   ;;  %v109_v13 = vstv %s201_s2 }
   0x2   :  { %v140_v5 = vpack.c.bf16 %v23_v2, %v22_v1  ;;  %v25_v6 = vld [vmem:[%s199_s1 + $0x18] sm:$0xff]  ;;  %v21_v8 = vld [vmem:[%s200_s0] sm:$0xff] }
   0x3   :  { %v143_v7 = vpack.c.bf16 %v25_v6, %v24_v3 }
   0x4   :  { %141 = vmatpush3.bf16.msra.mxu0 %v140_v5 }
   0x5   :  { %142 = vmatprep.subr.bf16.mxu0 %v152_v0 }
   0x8   :  { %144 = vmatpush3.bf16.msra.mxu0 %v143_v7  ;;  %v26_v9 = vld [vmem:[#allocation2] sm:$0xff] }
   0xb   :  { %137 = vmatmul.mubr.msk.f32.vlgmr.msra.gmra.mrb[0].mxu0 %vm27_vm2, %v21_v8 }
  0xde   :  { %v97_v10 = vpop.f32.mrb[0].mxu0 }
  0xdf   :  { %v101_v11 = vadd.f32 %v97_v10, %v26_v9  ;;  %v138_v12 = vpop.f32.mrb[1].mxu0 }
  0xe1   :  { %103 = vst.msk [vmem:[#allocation2] sm:$0xff] %vm19_vm0, %v101_v11 }
  0xe8   :  { %v107_v14 = vld [vmem:[#allocation2] sm:$0xff] }
  0xe9   :  { %v110_v15 = vadd.f32 %v109_v13, %v107_v14 }
  0xeb   :  { %v111_v16 = vsub.f32 0.0, %v110_v15 }
  0xed   :  { %v112_v17 = vmul.f32 1.442695, %v111_v16 }
  0xef   :  { %148 = vpow2.f32 %v112_v17 }
  0xf9   :  { %v149_v18 = vpop.eup %148 }
  0xfa   :  { %v114_v19 = vadd.f32 1.0, %v149_v18 }
  0xfc   :  { %150 = vrcp.f32 %v114_v19 }
 0x106   :  { %v151_v20 = vpop.eup %150 }
 0x107   :  { %117 = vst.msk [vmem:[%s202_s3] sm:$0xff] %vm19_vm0, %v151_v20 }

</bundles_post_ra>
